<compile_context>
chip_gen: v7x
topology: tpu7x:2x2x1
jax: 0.10.0
libtpu: 0.0.40
codegen_flags: <defaults>
</compile_context>

<pallas_src>
import functools

import jax
import jax.numpy as jnp
from jax.experimental import pallas as pl
from jax.experimental.pallas import tpu as pltpu


def _round_up(x, m):
    return (x + m - 1) // m * m


def _lora_kernel(x_ref,
                 w12a_ref,
                 w1b_ref, b1_ref,
                 w2b_ref, b2_ref,
                 wca_ref, wcb_ref, bc_ref,
                 o_ref, *, rank):
    # x tile is already bf16 (cast in the wrapper to halve the DMA).
    x = x_ref[...]                                                        # [TT, H] bf16

    # Fused LoRA "A" projection: x @ [W1A | W2A]  -> [TT, 2R]
    t12 = jnp.dot(x, w12a_ref[...], preferred_element_type=jnp.float32)  # [TT, 2R] f32
    t12 = t12.astype(jnp.bfloat16)
    t1 = t12[:, :rank]                                                   # [TT, R]
    t2 = t12[:, rank:]                                                   # [TT, R]

    # "B" projections (scaling already folded into weights/biases). f32 acc.
    a1 = jnp.dot(t1, w1b_ref[...], preferred_element_type=jnp.float32) + b1_ref[...]
    a2 = jnp.dot(t2, w2b_ref[...], preferred_element_type=jnp.float32) + b2_ref[...]

    # SwiGLU-style gating in f32 (v5e VPU has no bf16).
    inter = a1 * (a2 * jax.nn.sigmoid(a2))                               # [TT, F] f32

    # Down projection: ffn/2 -> rank -> hidden (bf16 MXU inputs, f32 acc).
    tc = jnp.dot(inter.astype(jnp.bfloat16), wca_ref[...],
                 preferred_element_type=jnp.float32)                     # [TT, R]
    out = jnp.dot(tc.astype(jnp.bfloat16), wcb_ref[...],
                  preferred_element_type=jnp.float32)                    # [TT, H]
    out = out + bc_ref[...]

    o_ref[...] = out.astype(o_ref.dtype)


def qwen_mlp_lora_path(hidden_states, params, *, scaling, token_tile=256,
                       compute_dtype=jnp.bfloat16):
    """hidden_states: [B, S, H]. params: dict of [in, out] weight matrices.

    token_tile: rows of tokens per grid step.  256 is a good default for
    v6e/v7x (cap here also keeps the [TT, F] f32 activations within v7x's
    64 MiB VMEM); 128 is fine on v5e.  Tail tokens are zero-padded.
    """
    B, S, H = hidden_states.shape
    T = B * S
    R = params["w1a"].shape[1]

    # Effective tile: multiple of 8, no larger than needed for small inputs.
    tile = _round_up(min(token_tile, _round_up(T, 8)), 8)
    Tp = _round_up(T, tile)

    x = hidden_states.reshape(T, H)
    if Tp != T:
        x = jnp.pad(x, ((0, Tp - T), (0, 0)))
    x = x.astype(compute_dtype)

    # Fuse the two A projections into one [H, 2R] matrix; fold `scaling`
    # into the (small) B matrices and biases (one-time rescale).
    w12a = jnp.concatenate([params["w1a"], params["w2a"]], axis=1).astype(compute_dtype)
    w1b = (params["w1b"] * scaling).astype(compute_dtype)
    w2b = (params["w2b"] * scaling).astype(compute_dtype)
    wca = params["wca"].astype(compute_dtype)
    wcb = (params["wcb"] * scaling).astype(compute_dtype)
    b1 = (params["b1"] * scaling).astype(jnp.float32)
    b2 = (params["b2"] * scaling).astype(jnp.float32)
    bc = (params["bc"] * scaling).astype(jnp.float32)

    def const_spec(arr):
        ndim = arr.ndim
        # Constant index_map => the block never changes; a single buffer is
        # enough (saves VMEM, matters on v7x's 64 MiB).
        return pl.BlockSpec(arr.shape, lambda i: (0,) * ndim,
                            pipeline_mode=pl.Buffered(1))

    out = pl.pallas_call(
        functools.partial(_lora_kernel, rank=R),
        out_shape=jax.ShapeDtypeStruct((Tp, H), hidden_states.dtype),
        grid=(Tp // tile,),
        in_specs=[
            pl.BlockSpec((tile, H), lambda i: (i, 0)),     # x tile
            const_spec(w12a),
            const_spec(w1b), const_spec(b1),
            const_spec(w2b), const_spec(b2),
            const_spec(wca), const_spec(wcb), const_spec(bc),
        ],
        out_specs=pl.BlockSpec((tile, H), lambda i: (i, 0)),
        compiler_params=pltpu.CompilerParams(
            dimension_semantics=("parallel",),
            vmem_limit_bytes=64 * 1024 * 1024),
    )(x, w12a, w1b, b1, w2b, b2, wca, wcb, bc)

    if Tp != T:
        out = out[:T]
    return out.reshape(B, S, H)


def _reference(hidden_states, params, scaling):
    x = hidden_states.astype(jnp.float32)
    a1 = (x @ params["w1a"] @ params["w1b"] + params["b1"]) * scaling
    a2 = (x @ params["w2a"] @ params["w2b"] + params["b2"]) * scaling
    inter = a1 * jax.nn.silu(a2)
    out = (inter @ params["wca"] @ params["wcb"] + params["bc"]) * scaling
    return out


if __name__ == "__main__":
    # Small synthetic config consistent with the module's __init__:
    #   hidden_size=32, intermediate_size=64 (ffn half = 32),
    #   lora_rank=8, lora_alpha=16  -> scaling = 2.0, lora_bias='all'
    hidden_size = 32
    ffn_half = 32
    lora_rank = 8
    scaling = 16.0 / 8.0

    B, S = 2, 8

    key = jax.random.PRNGKey(0)
    keys = jax.random.split(key, 10)

    # Deterministic synthetic parameters (torch Linear weight is [out, in];
    # we store the transpose [in, out]).  B-matrices are zero-initialized in
    # the original module; here we use small random values so the kernel's
    # output is non-trivial.
    params = {
        "w1a": jax.random.normal(keys[0], (hidden_size, lora_rank), jnp.float32) * 0.1,
        "w1b": jax.random.normal(keys[1], (lora_rank, ffn_half), jnp.float32) * 0.1,
        "b1":  jax.random.normal(keys[2], (1, ffn_half), jnp.float32) * 0.1,
        "w2a": jax.random.normal(keys[3], (hidden_size, lora_rank), jnp.float32) * 0.1,
        "w2b": jax.random.normal(keys[4], (lora_rank, ffn_half), jnp.float32) * 0.1,
        "b2":  jax.random.normal(keys[5], (1, ffn_half), jnp.float32) * 0.1,
        "wca": jax.random.normal(keys[6], (ffn_half, lora_rank), jnp.float32) * 0.1,
        "wcb": jax.random.normal(keys[7], (lora_rank, hidden_size), jnp.float32) * 0.1,
        "bc":  jax.random.normal(keys[8], (1, hidden_size), jnp.float32) * 0.1,
    }

    hidden_states = jax.random.normal(keys[9], (B, S, hidden_size), jnp.float32)

    out = qwen_mlp_lora_path(hidden_states, params, scaling=scaling)
    out = jax.block_until_ready(out)

    ref = _reference(hidden_states, params, scaling)
    assert out.shape == (B, S, hidden_size)
    # bf16 matmul inputs with f32 accumulation => loosened tolerance.
    assert jnp.allclose(out, ref, atol=3e-2, rtol=3e-2), "mismatch vs reference"

    print("KERNEL_OK")
</pallas_src>

<mosaic_0001>
module attributes {stable_mosaic.version = 11 : i64} {
  func.func @_lora_kernel(%arg0: i32, %arg1: memref<16x32xbf16, #tpu.memory_space<vmem>>, %arg2: memref<32x16xbf16, #tpu.memory_space<vmem>>, %arg3: memref<8x32xbf16, #tpu.memory_space<vmem>>, %arg4: memref<1x32xf32, #tpu.memory_space<vmem>>, %arg5: memref<8x32xbf16, #tpu.memory_space<vmem>>, %arg6: memref<1x32xf32, #tpu.memory_space<vmem>>, %arg7: memref<32x8xbf16, #tpu.memory_space<vmem>>, %arg8: memref<8x32xbf16, #tpu.memory_space<vmem>>, %arg9: memref<1x32xf32, #tpu.memory_space<vmem>>, %arg10: memref<16x32xf32, #tpu.memory_space<vmem>>) attributes {dimension_semantics = [#tpu.dimension_semantics<parallel>], iteration_bounds = array<i64: 1>, scalar_prefetch = 0 : i64, scratch_operands = 0 : i64, tpu.core_type = #tpu.core_type<tc>, window_params = [{transform_indices = @transform_0, window_bounds = array<i64: 16, 32>}, {pipeline_mode = #tpu.pipeline_mode<synchronous>, transform_indices = @transform_1, window_bounds = array<i64: 32, 16>}, {pipeline_mode = #tpu.pipeline_mode<synchronous>, transform_indices = @transform_2, window_bounds = array<i64: 8, 32>}, {pipeline_mode = #tpu.pipeline_mode<synchronous>, transform_indices = @transform_3, window_bounds = array<i64: 1, 32>}, {pipeline_mode = #tpu.pipeline_mode<synchronous>, transform_indices = @transform_4, window_bounds = array<i64: 8, 32>}, {pipeline_mode = #tpu.pipeline_mode<synchronous>, transform_indices = @transform_5, window_bounds = array<i64: 1, 32>}, {pipeline_mode = #tpu.pipeline_mode<synchronous>, transform_indices = @transform_6, window_bounds = array<i64: 32, 8>}, {pipeline_mode = #tpu.pipeline_mode<synchronous>, transform_indices = @transform_7, window_bounds = array<i64: 8, 32>}, {pipeline_mode = #tpu.pipeline_mode<synchronous>, transform_indices = @transform_8, window_bounds = array<i64: 1, 32>}, {transform_indices = @transform_9, window_bounds = array<i64: 16, 32>}]} {
    %c0 = arith.constant 0 : index
    %c0_0 = arith.constant 0 : index
    %0 = vector.load %arg1[%c0, %c0_0] : memref<16x32xbf16, #tpu.memory_space<vmem>>, vector<16x32xbf16>
    %c0_1 = arith.constant 0 : index
    %c0_2 = arith.constant 0 : index
    %1 = vector.load %arg2[%c0_1, %c0_2] : memref<32x16xbf16, #tpu.memory_space<vmem>>, vector<32x16xbf16>
    %cst = arith.constant dense<0.000000e+00> : vector<16x16xf32>
    %2 = tpu.matmul %0, %1, %cst {dimension_numbers = #tpu.dot_dimension_numbers<[1], [0], [0], [1], [0, 0, 1, 1], [], []>} : vector<16x32xbf16>, vector<32x16xbf16>, vector<16x16xf32> -> vector<16x16xf32>
    %3 = arith.truncf %2 : vector<16x16xf32> to vector<16x16xbf16>
    %4 = vector.extract_strided_slice %3 {offsets = [0, 0], sizes = [16, 8], strides = [1, 1]} : vector<16x16xbf16> to vector<16x8xbf16>
    %5 = vector.extract_strided_slice %3 {offsets = [0, 8], sizes = [16, 8], strides = [1, 1]} : vector<16x16xbf16> to vector<16x8xbf16>
    %c0_3 = arith.constant 0 : index
    %c0_4 = arith.constant 0 : index
    %6 = vector.load %arg3[%c0_3, %c0_4] : memref<8x32xbf16, #tpu.memory_space<vmem>>, vector<8x32xbf16>
    %cst_5 = arith.constant dense<0.000000e+00> : vector<16x32xf32>
    %7 = tpu.matmul %4, %6, %cst_5 {dimension_numbers = #tpu.dot_dimension_numbers<[1], [0], [0], [1], [0, 0, 1, 1], [], []>} : vector<16x8xbf16>, vector<8x32xbf16>, vector<16x32xf32> -> vector<16x32xf32>
    %c0_6 = arith.constant 0 : index
    %c0_7 = arith.constant 0 : index
    %8 = vector.load %arg4[%c0_6, %c0_7] : memref<1x32xf32, #tpu.memory_space<vmem>>, vector<1x32xf32>
    %9 = vector.broadcast %8 : vector<1x32xf32> to vector<16x32xf32>
    %10 = arith.addf %7, %9 : vector<16x32xf32>
    %c0_8 = arith.constant 0 : index
    %c0_9 = arith.constant 0 : index
    %11 = vector.load %arg5[%c0_8, %c0_9] : memref<8x32xbf16, #tpu.memory_space<vmem>>, vector<8x32xbf16>
    %cst_10 = arith.constant dense<0.000000e+00> : vector<16x32xf32>
    %12 = tpu.matmul %5, %11, %cst_10 {dimension_numbers = #tpu.dot_dimension_numbers<[1], [0], [0], [1], [0, 0, 1, 1], [], []>} : vector<16x8xbf16>, vector<8x32xbf16>, vector<16x32xf32> -> vector<16x32xf32>
    %c0_11 = arith.constant 0 : index
    %c0_12 = arith.constant 0 : index
    %13 = vector.load %arg6[%c0_11, %c0_12] : memref<1x32xf32, #tpu.memory_space<vmem>>, vector<1x32xf32>
    %14 = vector.broadcast %13 : vector<1x32xf32> to vector<16x32xf32>
    %15 = arith.addf %12, %14 : vector<16x32xf32>
    %16 = arith.negf %15 : vector<16x32xf32>
    %17 = math.exp %16 : vector<16x32xf32>
    %cst_13 = arith.constant 1.000000e+00 : f32
    %18 = vector.broadcast %cst_13 : f32 to vector<16x32xf32>
    %19 = arith.addf %18, %17 : vector<16x32xf32>
    %20 = arith.divf %18, %19 : vector<16x32xf32>
    %21 = arith.mulf %15, %20 : vector<16x32xf32>
    %22 = arith.mulf %10, %21 : vector<16x32xf32>
    %23 = arith.truncf %22 : vector<16x32xf32> to vector<16x32xbf16>
    %c0_14 = arith.constant 0 : index
    %c0_15 = arith.constant 0 : index
    %24 = vector.load %arg7[%c0_14, %c0_15] : memref<32x8xbf16, #tpu.memory_space<vmem>>, vector<32x8xbf16>
    %cst_16 = arith.constant dense<0.000000e+00> : vector<16x8xf32>
    %25 = tpu.matmul %23, %24, %cst_16 {dimension_numbers = #tpu.dot_dimension_numbers<[1], [0], [0], [1], [0, 0, 1, 1], [], []>} : vector<16x32xbf16>, vector<32x8xbf16>, vector<16x8xf32> -> vector<16x8xf32>
    %26 = arith.truncf %25 : vector<16x8xf32> to vector<16x8xbf16>
    %c0_17 = arith.constant 0 : index
    %c0_18 = arith.constant 0 : index
    %27 = vector.load %arg8[%c0_17, %c0_18] : memref<8x32xbf16, #tpu.memory_space<vmem>>, vector<8x32xbf16>
    %cst_19 = arith.constant dense<0.000000e+00> : vector<16x32xf32>
    %28 = tpu.matmul %26, %27, %cst_19 {dimension_numbers = #tpu.dot_dimension_numbers<[1], [0], [0], [1], [0, 0, 1, 1], [], []>} : vector<16x8xbf16>, vector<8x32xbf16>, vector<16x32xf32> -> vector<16x32xf32>
    %c0_20 = arith.constant 0 : index
    %c0_21 = arith.constant 0 : index
    %29 = vector.load %arg9[%c0_20, %c0_21] : memref<1x32xf32, #tpu.memory_space<vmem>>, vector<1x32xf32>
    %30 = vector.broadcast %29 : vector<1x32xf32> to vector<16x32xf32>
    %31 = arith.addf %28, %30 : vector<16x32xf32>
    %c0_22 = arith.constant 0 : index
    %c0_23 = arith.constant 0 : index
    %32 = vector.load %arg10[%c0_22, %c0_23] : memref<16x32xf32, #tpu.memory_space<vmem>>, vector<16x32xf32>
    tpu.vector_store %arg10[%c0_22, %c0_23], %31 {strides = array<i32>} : memref<16x32xf32, #tpu.memory_space<vmem>>, vector<16x32xf32>,
    return
  }
  func.func @transform_0(%arg0: i32) -> (i32, i32) {
    %c0_i32 = arith.constant 0 : i32
    %c0_i32_0 = arith.constant 0 : i32
    return %arg0, %c0_i32 : i32, i32
  }
  func.func @transform_1(%arg0: i32) -> (i32, i32) {
    %c0_i32 = arith.constant 0 : i32
    %c0_i32_0 = arith.constant 0 : i32
    %c0_i32_1 = arith.constant 0 : i32
    return %c0_i32, %c0_i32_0 : i32, i32
  }
  func.func @transform_2(%arg0: i32) -> (i32, i32) {
    %c0_i32 = arith.constant 0 : i32
    %c0_i32_0 = arith.constant 0 : i32
    %c0_i32_1 = arith.constant 0 : i32
    return %c0_i32, %c0_i32_0 : i32, i32
  }
  func.func @transform_3(%arg0: i32) -> (i32, i32) {
    %c0_i32 = arith.constant 0 : i32
    %c0_i32_0 = arith.constant 0 : i32
    %c0_i32_1 = arith.constant 0 : i32
    return %c0_i32, %c0_i32_0 : i32, i32
  }
  func.func @transform_4(%arg0: i32) -> (i32, i32) {
    %c0_i32 = arith.constant 0 : i32
    %c0_i32_0 = arith.constant 0 : i32
    %c0_i32_1 = arith.constant 0 : i32
    return %c0_i32, %c0_i32_0 : i32, i32
  }
  func.func @transform_5(%arg0: i32) -> (i32, i32) {
    %c0_i32 = arith.constant 0 : i32
    %c0_i32_0 = arith.constant 0 : i32
    %c0_i32_1 = arith.constant 0 : i32
    return %c0_i32, %c0_i32_0 : i32, i32
  }
  func.func @transform_6(%arg0: i32) -> (i32, i32) {
    %c0_i32 = arith.constant 0 : i32
    %c0_i32_0 = arith.constant 0 : i32
    %c0_i32_1 = arith.constant 0 : i32
    return %c0_i32, %c0_i32_0 : i32, i32
  }
  func.func @transform_7(%arg0: i32) -> (i32, i32) {
    %c0_i32 = arith.constant 0 : i32
    %c0_i32_0 = arith.constant 0 : i32
    %c0_i32_1 = arith.constant 0 : i32
    return %c0_i32, %c0_i32_0 : i32, i32
  }
  func.func @transform_8(%arg0: i32) -> (i32, i32) {
    %c0_i32 = arith.constant 0 : i32
    %c0_i32_0 = arith.constant 0 : i32
    %c0_i32_1 = arith.constant 0 : i32
    return %c0_i32, %c0_i32_0 : i32, i32
  }
  func.func @transform_9(%arg0: i32) -> (i32, i32) {
    %c0_i32 = arith.constant 0 : i32
    %c0_i32_0 = arith.constant 0 : i32
    return %arg0, %c0_i32 : i32, i32
  }
}

</mosaic_0001>

<bundles_post_ra>
// kernel: tpu_custom_call.1
= control target key start
LH: loop header
LB: loop body
LE: loop exit
PB: predicated region body
PF: predicated region fallthrough
CT: control target
= control target key end

     0   :  { %14 = vsyncpa [#allocation3], 0  ;;  %s1033_s0 = inlined_call_operand.hbm [shape: bf16[16,32], index: 0, kind: input, shape index: {}]   ;;  %s1034_s1 = inlined_call_operand.hbm [shape: bf16[32,16], index: 1, kind: input, shape index: {}]   ;;  %s1035_s2 = inlined_call_operand.hbm [shape: bf16[8,32], index: 2, kind: input, shape index: {}]   ;;  %s1036_s3 = inlined_call_operand.hbm [shape: f32[1,32], index: 3, kind: input, shape index: {}]   ;;  %s1037_s4 = inlined_call_operand.hbm [shape: bf16[8,32], index: 4, kind: input, shape index: {}]   ;;  %s1038_s5 = inlined_call_operand.hbm [shape: f32[1,32], index: 5, kind: input, shape index: {}]   ;;  %s1039_s6 = inlined_call_operand.hbm [shape: bf16[32,8], index: 6, kind: input, shape index: {}]   ;;  %s1040_s7 = inlined_call_operand.hbm [shape: bf16[8,32], index: 7, kind: input, shape index: {}]   ;;  %s1041_s8 = inlined_call_operand.hbm [shape: f32[1,32], index: 8, kind: input, shape index: {}]   ;;  %s1042_s9 = inlined_call_operand.hbm [shape: f32[16,32], index: 9, kind: output, shape index: {}]  }
   0x1   :  { %15 = vsyncpa [#allocation6], 0 }
   0x2   :  { %16 = vsyncpa [#allocation9], 0 }
   0x3   :  { %17 = vsyncpa [#allocation12], 0 }
   0x4   :  { %18 = vsyncpa [#allocation15], 0 }
   0x5   :  { %19 = vsyncpa [#allocation4], 0  ;;  %s807_s30 = smov [#allocation5]   ;;  %s808_s11 = smov [#allocation8]  }
   0x6   :  { %s37_s10 = sshll.u32 %s807_s30, 4  ;;  %s60_s12 = sshll.u32 %s808_s11, 4  ;;  %s38_s10 = int_to_ptr.vmem [resolvable:$true] %s37_s10  ;;  %s874_s12 = int_to_ptr.vmem [resolvable:$true] %s60_s12 }
   0x7   :  { %s575_s15 = scalar_lea.hbm %s1034_s1, 256 }
   0x8   :  { %p576_p0 = scmp.ne.s32.totalorder %s1034_s1, %s575_s15  ;;  %p579_p1 = scmp.lt.u32.totalorder %s575_s15, %s1034_s1 }
   0xa   :  { %p581_p2 = pnand %p579_p1, %p576_p0 }
   0xc   :  { %584 = shalt.err (!%p581_p2)
}
   0xd   :  { %s585_s20 = scalar_lea.vmem %s38_s10, 256  ;;  %p590_p4 = scmp.lt.s32.totalorder %s38_s10, %s38_s10 }
   0xe   :  { %p586_p3 = scmp.ne.s32.totalorder %s38_s10, %s585_s20  ;;  %p591_p5 = scmp.lt.s32.totalorder %s585_s20, %s585_s20 }
  0x10   :  { %p592_p6 = por %p591_p5, %p590_p4 }
  0x12   :  { %p593_p7 = pnand %p592_p6, %p586_p3 }
  0x14   :  { %596 = shalt.err (!%p593_p7)
}
  0x15   :  { %s809_s21 = smov 64   ;;  %s810_s22 = smov 4  }
  0x16   :  { %43 = dma.hbm_to_vmem [thread:$0]  %s1034_s1, 256, %s38_s10, [#allocation6], %s809_s21, %s809_s21, %s810_s22  }
  0x17   :  { %s597_s27 = scalar_lea.hbm %s1036_s3, 16 }
  0x18   :  { %p598_p8 = scmp.ne.s32.totalorder %s1036_s3, %s597_s27  ;;  %p601_p9 = scmp.lt.u32.totalorder %s597_s27, %s1036_s3 }
  0x1a   :  { %p603_p10 = pnand %p601_p9, %p598_p8 }
  0x1c   :  { %606 = shalt.err (!%p603_p10)
}
  0x1d   :  { %s607_s13 = scalar_lea.vmem %s874_s12, 16  ;;  %s611_s1 = scalar_lea.vmem %s874_s12, 32 }
  0x1e   :  { %p608_p11 = scmp.ne.s32.totalorder %s874_s12, %s607_s13  ;;  %p612_p12 = scmp.lt.s32.totalorder %s874_s12, %s874_s12 }
  0x1f   :  { %p613_p13 = scmp.lt.s32.totalorder %s611_s1, %s607_s13 }
  0x21   :  { %p614_p0 = por %p613_p13, %p612_p12 }
  0x23   :  { %p615_p1 = pnand %p614_p0, %p608_p11 }
  0x25   :  { %618 = shalt.err (!%p615_p1)
}
  0x26   :  { %63 = dma.hbm_to_vmem [thread:$0]  %s1036_s3, 16, %s874_s12, [#allocation9]  }
  0x27   :  { %s811_s15 = smov [#allocation11]   ;;  %s812_s17 = smov [#allocation14]  }
  0x28   :  { %s80_s16 = sshll.u32 %s811_s15, 4  ;;  %s102_s18 = sshll.u32 %s812_s17, 4  ;;  %s81_s16 = int_to_ptr.vmem [resolvable:$true] %s80_s16  ;;  %s103_s18 = int_to_ptr.vmem [resolvable:$true] %s102_s18 }
  0x29   :  { %s619_s23 = scalar_lea.hbm %s1038_s5, 16 }
  0x2a   :  { %p620_p2 = scmp.ne.s32.totalorder %s1038_s5, %s619_s23  ;;  %p623_p3 = scmp.lt.u32.totalorder %s619_s23, %s1038_s5 }
  0x2c   :  { %p625_p4 = pnand %p623_p3, %p620_p2 }
  0x2e   :  { %628 = shalt.err (!%p625_p4)
}
  0x2f   :  { %s629_s3 = scalar_lea.vmem %s81_s16, 16  ;;  %s633_s12 = scalar_lea.vmem %s81_s16, 32 }
  0x30   :  { %p630_p5 = scmp.ne.s32.totalorder %s81_s16, %s629_s3  ;;  %p634_p6 = scmp.lt.s32.totalorder %s81_s16, %s81_s16 }
  0x31   :  { %p635_p7 = scmp.lt.s32.totalorder %s633_s12, %s629_s3 }
  0x33   :  { %p636_p8 = por %p635_p7, %p634_p6 }
  0x35   :  { %p637_p9 = pnand %p636_p8, %p630_p5 }
  0x37   :  { %640 = shalt.err (!%p637_p9)
}
  0x38   :  { %83 = dma.hbm_to_vmem [thread:$0]  %s1038_s5, 16, %s81_s16, [#allocation12]  }
  0x39   :  { %s641_s13 = scalar_lea.hbm %s1040_s7, 64 }
  0x3a   :  { %p642_p10 = scmp.ne.s32.totalorder %s1040_s7, %s641_s13  ;;  %p645_p11 = scmp.lt.u32.totalorder %s641_s13, %s1040_s7 }
  0x3c   :  { %p647_p12 = pnand %p645_p11, %p642_p10 }
  0x3e   :  { %650 = shalt.err (!%p647_p12)
}
  0x3f   :  { %s651_s17 = scalar_lea.vmem %s103_s18, 64  ;;  %p656_p0 = scmp.lt.s32.totalorder %s103_s18, %s103_s18 }
  0x40   :  { %p652_p13 = scmp.ne.s32.totalorder %s103_s18, %s651_s17  ;;  %p657_p1 = scmp.lt.s32.totalorder %s651_s17, %s651_s17 }
  0x42   :  { %p658_p2 = por %p657_p1, %p656_p0 }
  0x44   :  { %p659_p3 = pnand %p658_p2, %p652_p13 }
  0x46   :  { %662 = shalt.err (!%p659_p3)
}
  0x47   :  { %105 = dma.hbm_to_vmem [thread:$0]  %s1040_s7, 64, %s103_s18, [#allocation15]  }
  0x48   :  { %s813_s19 = smov [#allocation2]   ;;  %s814_s23 = smov [#allocation7]  }
  0x49   :  { %s25_s20 = sshll.u32 %s813_s19, 4  ;;  %s50_s24 = sshll.u32 %s814_s23, 4  ;;  %s26_s20 = int_to_ptr.vmem [resolvable:$true] %s25_s20  ;;  %s51_s24 = int_to_ptr.vmem [resolvable:$true] %s50_s24 }
  0x4a   :  { %s663_s27 = scalar_lea.hbm %s1033_s0, 128 }
  0x4b   :  { %p664_p4 = scmp.ne.s32.totalorder %s1033_s0, %s663_s27  ;;  %p667_p5 = scmp.lt.u32.totalorder %s663_s27, %s1033_s0 }
  0x4d   :  { %p669_p6 = pnand %p667_p5, %p664_p4 }
  0x4f   :  { %672 = shalt.err (!%p669_p6)
}
  0x50   :  { %s673_s7 = scalar_lea.vmem %s26_s20, 128  ;;  %p678_p8 = scmp.lt.s32.totalorder %s26_s20, %s26_s20 }
  0x51   :  { %p674_p7 = scmp.ne.s32.totalorder %s26_s20, %s673_s7  ;;  %p679_p9 = scmp.lt.s32.totalorder %s673_s7, %s673_s7 }
  0x53   :  { %p680_p10 = por %p679_p9, %p678_p8 }
  0x55   :  { %p681_p11 = pnand %p680_p10, %p674_p7 }
  0x57   :  { %684 = shalt.err (!%p681_p11)
}
  0x58   :  { %31 = dma.hbm_to_vmem [thread:$0]  %s1033_s0, 128, %s26_s20, [#allocation3], %s809_s21, %s809_s21, %s810_s22  }
  0x59   :  { %s685_s1 = scalar_lea.hbm %s1035_s2, 64 }
  0x5a   :  { %p686_p12 = scmp.ne.s32.totalorder %s1035_s2, %s685_s1  ;;  %p689_p13 = scmp.lt.u32.totalorder %s685_s1, %s1035_s2 }
  0x5c   :  { %p691_p0 = pnand %p689_p13, %p686_p12 }
  0x5e   :  { %694 = shalt.err (!%p691_p0)
}
  0x5f   :  { %s695_s5 = scalar_lea.vmem %s51_s24, 64  ;;  %p700_p2 = scmp.lt.s32.totalorder %s51_s24, %s51_s24 }
  0x60   :  { %p696_p1 = scmp.ne.s32.totalorder %s51_s24, %s695_s5  ;;  %p701_p3 = scmp.lt.s32.totalorder %s695_s5, %s695_s5 }
  0x62   :  { %p702_p4 = por %p701_p3, %p700_p2 }
  0x64   :  { %p703_p5 = pnand %p702_p4, %p696_p1 }
  0x66   :  { %706 = shalt.err (!%p703_p5)
}
  0x67   :  { %53 = dma.hbm_to_vmem [thread:$0]  %s1035_s2, 64, %s51_s24, [#allocation6]  }
  0x68   :  { %s815_s19 = smov [#allocation10]   ;;  %s816_s23 = smov [#allocation13]  }
  0x69   :  { %s70_s20 = sshll.u32 %s815_s19, 4  ;;  %s89_s25 = sshll.u32 %s816_s23, 4  ;;  %s71_s20 = int_to_ptr.vmem [resolvable:$true] %s70_s20  ;;  %s960_s25 = int_to_ptr.vmem [resolvable:$true] %s89_s25 }
  0x6a   :  { %s707_s3 = scalar_lea.hbm %s1037_s4, 64 }
  0x6b   :  { %p708_p6 = scmp.ne.s32.totalorder %s1037_s4, %s707_s3  ;;  %p711_p7 = scmp.lt.u32.totalorder %s707_s3, %s1037_s4 }
  0x6d   :  { %p713_p8 = pnand %p711_p7, %p708_p6 }
  0x6f   :  { %716 = shalt.err (!%p713_p8)
}
  0x70   :  { %s717_s2 = scalar_lea.vmem %s71_s20, 64  ;;  %p722_p10 = scmp.lt.s32.totalorder %s71_s20, %s71_s20 }
  0x71   :  { %p718_p9 = scmp.ne.s32.totalorder %s71_s20, %s717_s2  ;;  %p723_p11 = scmp.lt.s32.totalorder %s717_s2, %s717_s2 }
  0x73   :  { %p724_p12 = por %p723_p11, %p722_p10 }
  0x75   :  { %p725_p13 = pnand %p724_p12, %p718_p9 }
  0x77   :  { %728 = shalt.err (!%p725_p13)
}
  0x78   :  { %73 = dma.hbm_to_vmem [thread:$0]  %s1037_s4, 64, %s71_s20, [#allocation9]  }
  0x79   :  { %s729_s13 = scalar_lea.hbm %s1039_s6, 256 }
  0x7a   :  { %p730_p0 = scmp.ne.s32.totalorder %s1039_s6, %s729_s13  ;;  %p733_p1 = scmp.lt.u32.totalorder %s729_s13, %s1039_s6 }
  0x7c   :  { %p735_p2 = pnand %p733_p1, %p730_p0 }
  0x7e   :  { %738 = shalt.err (!%p735_p2)
}
  0x7f   :  { %s739_s17 = scalar_lea.vmem %s960_s25, 256  ;;  %p744_p4 = scmp.lt.s32.totalorder %s960_s25, %s960_s25 }
  0x80   :  { %p740_p3 = scmp.ne.s32.totalorder %s960_s25, %s739_s17  ;;  %p745_p5 = scmp.lt.s32.totalorder %s739_s17, %s739_s17 }
  0x82   :  { %p746_p6 = por %p745_p5, %p744_p4 }
  0x84   :  { %p747_p7 = pnand %p746_p6, %p740_p3 }
  0x86   :  { %750 = shalt.err (!%p747_p7)
}
  0x87   :  { %95 = dma.hbm_to_vmem [thread:$0]  %s1039_s6, 256, %s960_s25, [#allocation12], %s809_s21, %s809_s21, %s810_s22  }
  0x88   :  { %s817_s0 = smov [#allocation16]   ;;  %s751_s23 = scalar_lea.hbm %s1041_s8, 16 }
  0x89   :  { %s112_s16 = sshll.u32 %s817_s0, 4  ;;  %p752_p8 = scmp.ne.s32.totalorder %s1041_s8, %s751_s23  ;;  %s113_s16 = int_to_ptr.vmem [resolvable:$true] %s112_s16 }
  0x8a   :  { %p755_p9 = scmp.lt.u32.totalorder %s751_s23, %s1041_s8 }
  0x8c   :  { %p757_p10 = pnand %p755_p9, %p752_p8 }
  0x8e   :  { %760 = shalt.err (!%p757_p10)
}
  0x8f   :  { %s761_s28 = scalar_lea.vmem %s113_s16, 16  ;;  %s765_s6 = scalar_lea.vmem %s113_s16, 32 }
  0x90   :  { %p762_p11 = scmp.ne.s32.totalorder %s113_s16, %s761_s28  ;;  %p766_p12 = scmp.lt.s32.totalorder %s113_s16, %s113_s16 }
  0x91   :  { %p767_p13 = scmp.lt.s32.totalorder %s765_s6, %s761_s28 }
  0x93   :  { %p768_p0 = por %p767_p13, %p766_p12 }
  0x95   :  { %p769_p1 = pnand %p768_p0, %p762_p11 }
  0x97   :  { %772 = shalt.err (!%p769_p1)
}
  0x98   :  { %115 = dma.hbm_to_vmem [thread:$0]  %s1041_s8, 16, %s113_s16, [#allocation15]  }
  0x99   :  { %795 = dma.done.wait [#allocation3], 128  }
  0x9a   :  { %796 = vsyncadd [#allocation3], 4294967168 }
  0x9b   :  { %797 = dma.done.wait [#allocation6], 320  }
  0x9c   :  { %798 = vsyncadd [#allocation6], 4294966976 }
  0x9d   :  { %799 = dma.done.wait [#allocation9], 80  }
  0x9e   :  { %800 = vsyncadd [#allocation9], 4294967216 }
  0x9f   :  { %801 = dma.done.wait [#allocation12], 272  }
  0xa0   :  { %802 = vsyncadd [#allocation12], 4294967024 }
  0xa1   :  { %803 = dma.done.wait [#allocation15], 80  }
  0xa2   :  { %804 = vsyncadd [#allocation15], 4294967216  ;;  %v818_v0 = vmov 0.0   ;;  %vm819_vm0 = vmmov 0   ;;  %v562_v1 = vld [vmem:[#allocation5] sm:$0xff]   ;;  %v563_v2 = vld [vmem:[#allocation5 + $0x8] sm:$0xff]  }
  0xa3   :  { %511 = vmatprep.subr.bf16.mxu0 %v818_v0  ;;  %515 = vmatprep.mubr.msk.bf16.mxu0 %vm819_vm0, %v818_v0  ;;  %v564_v3 = vld [vmem:[#allocation2] sm:$0xff]   ;;  %vm167_vm1 = vcmask 261120   ;;  %v213_v4 = vld [vmem:[#allocation7] sm:$0xf]  ;;  %vm225_vm2 = vcmask 1043456   ;;  %vm221_vm3 = vcmask 64512  }
  0xa4   :  { %519 = vmatprep.subr.bf16.mxu1 %v818_v0  ;;  %521 = vmatprep.mubr.msk.bf16.mxu1 %vm819_vm0, %v818_v0  ;;  %v227_v5 = vsel %vm225_vm2, %v213_v4, 0  ;;  %v270_v7 = vld [vmem:[#allocation10] sm:$0xf]  ;;  %s820_s8 = smov 120   ;;  %v565_v18 = vld [vmem:[#allocation13] sm:$0xff]   ;;  %v566_v19 = vld [vmem:[#allocation13 + $0x8] sm:$0xff]  }
  0xa5   :  { %512 = vmatpush3.bf16.msra.mxu0 %v562_v1  ;;  %520 = vmatpush3.bf16.msra.mxu1 %v227_v5  ;;  %v285_v12 = vsel %vm225_vm2, %v270_v7, 0  ;;  %v406_v20 = vld [vmem:[#allocation14] sm:$0xf]  ;;  %v490_v22 = vld [vmem:[#allocation11] ss:$0 sm:$0xff]  ;;  %s821_s25 = smov [#allocation17]  }
  0xa6   :  { %513 = vmatprep.subr.bf16.mxu0 %v818_v0  ;;  %525 = vmatprep.subr.bf16.mxu1 %v818_v0  ;;  %v418_v21 = vsel %vm225_vm2, %v406_v20, 0  ;;  %v488_v35 = vld [vmem:[#allocation8] ss:$0 sm:$0xff]  ;;  %v497_v50 = vld [vmem:[#allocation16] ss:$0 sm:$0xff]  ;;  %s468_s29 = sshll.u32 %s821_s25, 4  ;;  %s469_s29 = int_to_ptr.vmem [resolvable:$true] %s468_s29 }
  0xa7   :  { %s773_s7 = scalar_lea.vmem %s469_s29, 256  ;;  %p778_p3 = scmp.lt.s32.totalorder %s469_s29, %s469_s29 }
  0xa8   :  { %p774_p2 = scmp.ne.s32.totalorder %s469_s29, %s773_s7  ;;  %p779_p4 = scmp.lt.s32.totalorder %s773_s7, %s773_s7 }
  0xa9   :  { %514 = vmatpush3.bf16.msra.mxu0 %v563_v2 }
  0xaa   :  { %531 = vmatprep.subr.bf16.mxu0 %v818_v0  ;;  %p780_p5 = por %p779_p4, %p778_p3 }
  0xac   :  { %516 = vmatmul.mubr.msk.bf16.vlgmr.msra.gmra.mrb[0].mxu0 %vm167_vm1, %v564_v3  ;;  %p781_p6 = pnand %p780_p5, %p774_p2 }
  0xad   :  { %535 = vmatprep.mubr.msk.bf16.mxu0 %vm819_vm0, %v818_v0  ;;  %532 = vmatpush3.bf16.msra.mxu0 %v565_v18 }
  0xae   :  { %533 = vmatprep.subr.bf16.mxu0 %v818_v0 }
  0xb1   :  { %534 = vmatpush3.bf16.msra.mxu0 %v566_v19 }
 0x17f   :  { %v205_v6 = vpop.f32.mrb[0].mxu0 }
 0x180   :  { %v517_v8 = vpop.f32.mrb[1].mxu0 }
 0x181   :  { %v208_v9 = vpop.f32.mrb[2].mxu0 }
 0x182   :  { %v212_v10 = vpack.c.bf16 %v208_v9, %v205_v6  ;;  %v518_v11 = vpop.f32.mrb[3].mxu0 }
 0x184   :  { %522 = vmatmul.mubr.msk.bf16.vlgmr.msra.gmra.mrb[0].mxu1 %vm221_vm3, %v212_v10  ;;  %279 = vrot.lane.b32.xlu0 %v212_v10, %s820_s8 }
 0x185   :  { %526 = vmatpush3.bf16.msra.mxu1 %v285_v12  ;;  %527 = vmatprep.mubr.msk.bf16.mxu1 %vm819_vm0, %v818_v0 }
 0x186   :  { %539 = vmatprep.subr.bf16.mxu1 %v818_v0 }
 0x1f6   :  { %v280_v13 = vpop.permute.xlu0 %279 }
 0x1f7   :  { %528 = vmatmul.mubr.msk.bf16.vlgmr.msra.gmra.mrb[4].mxu1 %vm221_vm3, %v280_v13 }
 0x1f8   :  { %541 = vmatprep.mubr.msk.bf16.mxu1 %vm819_vm0, %v818_v0  ;;  %540 = vmatpush3.bf16.msra.mxu1 %v418_v21 }
 0x257   :  { %v263_v14 = vpop.f32.mrb[0].mxu1 }
 0x258   :  { %v523_v15 = vpop.f32.mrb[1].mxu1  ;;  %v264_v37 = vadd.f32 %v488_v35, %v263_v14 }
 0x259   :  { %v266_v16 = vpop.f32.mrb[2].mxu1 }
 0x25a   :  { %v524_v17 = vpop.f32.mrb[3].mxu1  ;;  %v267_v40 = vadd.f32 %v488_v35, %v266_v16 }
 0x2ca   :  { %v321_v23 = vpop.f32.mrb[4].mxu1 }
 0x2cb   :  { %v322_v24 = vadd.f32 %v490_v22, %v321_v23  ;;  %v529_v25 = vpop.f32.mrb[5].mxu1 }
 0x2cc   :  { %v324_v26 = vpop.f32.mrb[6].mxu1 }
 0x2cd   :  { %v492_v27 = vmul.f32 -1.442695, %v322_v24  ;;  %v325_v28 = vadd.f32 %v490_v22, %v324_v26  ;;  %v530_v29 = vpop.f32.mrb[7].mxu1 }
 0x2cf   :  { %567 = vpow2.f32 %v492_v27  ;;  %v493_v30 = vmul.f32 -1.442695, %v325_v28 }
 0x2d1   :  { %569 = vpow2.f32 %v493_v30 }
 0x2d9   :  { %v568_v31 = vpop.eup %567 }
 0x2da   :  { %v334_v32 = vadd.f32 1.0, %v568_v31 }
 0x2db   :  { %v570_v33 = vpop.eup %569 }
 0x2dc   :  { %571 = vrcp.f32 %v334_v32  ;;  %v335_v34 = vadd.f32 1.0, %v570_v33 }
 0x2de   :  { %573 = vrcp.f32 %v335_v34 }
 0x2e6   :  { %v572_v36 = vpop.eup %571 }
 0x2e7   :  { %v340_v38 = vmul.f32 %v572_v36, %v322_v24 }
 0x2e8   :  { %v574_v39 = vpop.eup %573 }
 0x2e9   :  { %v342_v41 = vmul.f32 %v340_v38, %v264_v37  ;;  %v341_v42 = vmul.f32 %v574_v39, %v325_v28 }
 0x2eb   :  { %v343_v43 = vmul.f32 %v341_v42, %v267_v40 }
 0x2ed   :  { %v344_v44 = vpack.c.bf16 %v343_v43, %v342_v41 }
 0x2ef   :  { %536 = vmatmul.mubr.msk.bf16.vlgmr.msra.gmra.mrb[4].mxu0 %vm167_vm1, %v344_v44 }
 0x3c2   :  { %v398_v45 = vpop.f32.mrb[4].mxu0 }
 0x3c3   :  { %v537_v46 = vpop.f32.mrb[5].mxu0 }
 0x3c4   :  { %v401_v47 = vpop.f32.mrb[6].mxu0 }
 0x3c5   :  { %v405_v48 = vpack.c.bf16 %v401_v47, %v398_v45  ;;  %v538_v49 = vpop.f32.mrb[7].mxu0 }
 0x3c7   :  { %542 = vmatmul.mubr.msk.bf16.vlgmr.msra.gmra.mrb[8].mxu1 %vm221_vm3, %v405_v48 }
 0x49a   :  { %v454_v51 = vpop.f32.mrb[8].mxu1 }
 0x49b   :  { %v455_v52 = vadd.f32 %v497_v50, %v454_v51  ;;  %v543_v53 = vpop.f32.mrb[9].mxu1 }
 0x49c   :  { %v457_v54 = vpop.f32.mrb[10].mxu1 }
 0x49d   :  { %461 = vst.msk [vmem:[#allocation17] sm:$0xff] %vm167_vm1, %v455_v52  ;;  %v458_v55 = vadd.f32 %v497_v50, %v457_v54  ;;  %v544_v56 = vpop.f32.mrb[11].mxu1 }
 0x49f   :  { %462 = vst.msk [vmem:[#allocation17 + $0x8] sm:$0xff] %vm167_vm1, %v458_v55 }
 0x4a0   :  { %784 = shalt.err (!%p781_p6)
}
 0x4a1   :  { %s785_s18 = scalar_lea.hbm %s1042_s9, 256 }
 0x4a2   :  { %p786_p7 = scmp.ne.s32.totalorder %s1042_s9, %s785_s18  ;;  %p789_p8 = scmp.lt.u32.totalorder %s785_s18, %s1042_s9 }
 0x4a4   :  { %p791_p9 = pnand %p789_p8, %p786_p7 }
 0x4a6   :  { %794 = shalt.err (!%p791_p9)
}
 0x4a7   :  { %s822_s10 = smov 128   ;;  %s823_s14 = smov 8  }
 0x4a8   :  { %474 = dma.vmem_to_hbm [thread:$0]  %s469_s29, 256, %s1042_s9, [#allocation4], %s822_s10, %s822_s10, %s823_s14  }
 0x4a9   :  { %805 = dma.done.wait [#allocation4], 256  }
 0x4aa   :  { %806 = vsyncadd [#allocation4], 4294967040 }
 0x4ab   :  { %478 = vsyncpa [#allocation3], 1 }
 0x4ac   :  { %479 = vsyncpa [#allocation6], 1 }
 0x4ad   :  { %480 = vsyncpa [#allocation9], 1 }
 0x4ae   :  { %481 = vsyncpa [#allocation12], 1 }
 0x4af   :  { %482 = vsyncpa [#allocation15], 1 }
 0x4b0   :  { %483 = vsyncpa [#allocation4], 1 }

</bundles_post_ra>
